<compile_context>
chip_gen: v7x
topology: tpu7x:2x2x1
jax: 0.10.0
libtpu: 0.0.40
codegen_flags: <defaults>
</compile_context>

<pallas_src>
import math

import jax
import jax.numpy as jnp
import numpy as np
from jax.experimental import pallas as pl
from jax.experimental.pallas import tpu as pltpu


def _round_up(x, m):
    return ((x + m - 1) // m) * m


def _pad_lanes(a, width):
    """Zero-pad the last (lane) dim of `a` up to static `width`."""
    pad = width - a.shape[-1]
    if pad == 0:
        return a
    return jnp.concatenate(
        [a, jnp.zeros(a.shape[:-1] + (pad,), a.dtype)], axis=-1)


def _vmem_cap_bytes():
    try:
        return int(pltpu.get_tpu_info().vmem_capacity_bytes)
    except Exception:
        return 64 << 20   # v7x per-TensorCore floor; v5e/v6e have 128 MiB


# ----------------------------------------------------------------------------
# Kernel 1: K/V projection of `memory`, tiled over (batch, seq-chunk), bf16 out.
# ----------------------------------------------------------------------------
def _kv_proj_kernel(mem_ref, wk_ref, wv_ref, bk_ref, bv_ref, k_ref, v_ref):
    m = mem_ref[...]                                            # (ts, E1) bf16
    k_ref[...] = (jnp.dot(m, wk_ref[...], preferred_element_type=jnp.float32)
                  + bk_ref[...]).astype(k_ref.dtype)
    v_ref[...] = (jnp.dot(m, wv_ref[...], preferred_element_type=jnp.float32)
                  + bv_ref[...]).astype(v_ref.dtype)


def _kv_projection(memory_bf16, wk, wv, bk, bv):
    B, S, E1 = memory_bf16.shape
    H = wk.shape[1]
    # Fixed seq tile (multiple of 8). pl.cdiv grid: padded rows of the last
    # partial block are row-independent garbage whose output writes are dropped.
    ts = min(512, _round_up(S, 8))
    grid = (B, pl.cdiv(S, ts))
    return pl.pallas_call(
        _kv_proj_kernel,
        out_shape=(jax.ShapeDtypeStruct((B, S, H), jnp.bfloat16),
                   jax.ShapeDtypeStruct((B, S, H), jnp.bfloat16)),
        grid=grid,
        in_specs=[
            pl.BlockSpec((None, ts, E1), lambda b, s: (b, s, 0)),   # memory tile
            pl.BlockSpec((E1, H), lambda b, s: (0, 0)),             # wk
            pl.BlockSpec((E1, H), lambda b, s: (0, 0)),             # wv
            pl.BlockSpec((1, H), lambda b, s: (0, 0)),              # bk
            pl.BlockSpec((1, H), lambda b, s: (0, 0)),              # bv
        ],
        out_specs=[
            pl.BlockSpec((None, ts, H), lambda b, s: (b, s, 0)),
            pl.BlockSpec((None, ts, H), lambda b, s: (b, s, 0)),
        ],
        compiler_params=pltpu.CompilerParams(
            dimension_semantics=("parallel", "parallel")),
    )(memory_bf16, wk, wv, bk, bv)


# ----------------------------------------------------------------------------
# Kernel 2: one decode step. Grid = (batch-tiles [parallel], seq-tiles [arbitrary])
# with online-softmax accumulation over the streamed k/v tiles.
# ----------------------------------------------------------------------------
def _make_step_kernel(H, E2, num_cells):
    Hp = _round_up(H, 128)
    E2p = _round_up(E2, 128)

    def kernel(*refs):
        (in0_ref, state_ref, k_ref, v_ref, bias_ref, hmask_ref,
         wq_ref, bq_ref, wo_ref, bo_ref, wof_ref, bof_ref) = refs[:12]
        gru_refs = refs[12:12 + 4 * num_cells]
        out_ref = refs[12 + 4 * num_cells]
        qb_sc, m_sc, l_sc, acc_sc = refs[12 + 4 * num_cells + 1:]

        s = pl.program_id(1)
        last = pl.num_programs(1) - 1

        # ------- s == 0: GRU stack, q projection, online-softmax init --------
        @pl.when(s == 0)
        def _():
            x = in0_ref[...]                                    # (tb, E2+H) f32
            hid_parts = []
            h_new = None
            for i in range(num_cells):
                wih = gru_refs[4 * i][...]                      # (in, 3H) bf16
                whh = gru_refs[4 * i + 1][...]                  # (H, 3H) bf16
                bih = gru_refs[4 * i + 2][...]                  # (1, 3H) f32
                bhh = gru_refs[4 * i + 3][...]                  # (1, 3H) f32
                h_prev = state_ref[:, i * H:(i + 1) * H]        # (tb, H) f32
                gi = jnp.dot(x.astype(jnp.bfloat16), wih,
                             preferred_element_type=jnp.float32) + bih
                gh = jnp.dot(h_prev.astype(jnp.bfloat16), whh,
                             preferred_element_type=jnp.float32) + bhh
                # f32 gate math (v5e has no bf16 VPU/EUP)
                r = jax.nn.sigmoid(gi[:, 0 * H:1 * H] + gh[:, 0 * H:1 * H])
                z = jax.nn.sigmoid(gi[:, 1 * H:2 * H] + gh[:, 1 * H:2 * H])
                n = jnp.tanh(gi[:, 2 * H:3 * H] + r * gh[:, 2 * H:3 * H])
                h_new = (1.0 - z) * n + z * h_prev
                hid_parts.append(h_new)
                x = h_new

            # Hidden states: one lane-aligned store; block stays VMEM-resident
            # across the seq axis and is DMA'd out after the last seq tile.
            out_ref[:, E2p + Hp:E2p + Hp + num_cells * Hp] = jnp.concatenate(
                [_pad_lanes(h, Hp) for h in hid_parts], axis=-1)

            # q projection (1/sqrt(head_dim) pre-folded into wq/bq), per-head mask.
            q = jnp.dot(h_new.astype(jnp.bfloat16), wq_ref[...],
                        preferred_element_type=jnp.float32) + bq_ref[...]
            qb_sc[...] = (q[:, None, :] * hmask_ref[...][None, :, :]
                          ).astype(qb_sc.dtype)                 # (tb, nh, H) bf16

            m_sc[...] = jnp.full(m_sc.shape, -jnp.inf, dtype=m_sc.dtype)
            l_sc[...] = jnp.zeros(l_sc.shape, dtype=l_sc.dtype)
            acc_sc[...] = jnp.zeros(acc_sc.shape, dtype=acc_sc.dtype)

        # ------- every seq tile: streamed attention w/ online softmax --------
        k = k_ref[...]                                          # (tb, ts, H) bf16
        v = v_ref[...]                                          # (tb, ts, H) bf16
        scores = jnp.einsum('bnh,bsh->bns', qb_sc[...], k,
                            preferred_element_type=jnp.float32)  # (tb, nh, ts)
        scores = scores + bias_ref[...]                          # + (tb, 1, ts)
        m_new = jnp.maximum(m_sc[...], jnp.max(scores, axis=-1, keepdims=True))
        alpha = jnp.exp(m_sc[...] - m_new)
        p = jnp.exp(scores - m_new)
        l_sc[...] = alpha * l_sc[...] + jnp.sum(p, axis=-1, keepdims=True)
        acc_sc[...] = alpha * acc_sc[...] + jnp.einsum(
            'bns,bsh->bnh', p.astype(jnp.bfloat16), v,
            preferred_element_type=jnp.float32)
        m_sc[...] = m_new

        # ------- s == last: collapse heads, projections, lane-aligned store --
        @pl.when(s == last)
        def _():
            ctx_heads = acc_sc[...] / l_sc[...]                  # exact divide
            ctx_pre = jnp.sum(ctx_heads * hmask_ref[...][None, :, :], axis=1)
            ctx_pre_b = ctx_pre.astype(jnp.bfloat16)
            ctx = jnp.dot(ctx_pre_b, wo_ref[...],
                          preferred_element_type=jnp.float32) + bo_ref[...]
            # out = ctx @ wout + bout, re-associated via the fused weight so it
            # runs in parallel with the ctx projection (shorter MXU chain).
            out = jnp.dot(ctx_pre_b, wof_ref[...],
                          preferred_element_type=jnp.float32) + bof_ref[...]
            out_ref[:, 0:E2p + Hp] = jnp.concatenate(
                [_pad_lanes(out, E2p), _pad_lanes(ctx, Hp)], axis=-1)

    return kernel


# ----------------------------------------------------------------------------
# Wrapper (glue: None handling, weight fusion/casting, pallas_call plumbing)
# ----------------------------------------------------------------------------
def attention_gru_cell(params, memory, prev_predict, prev_attn=None,
                       prev_state=None, memory_key_padding_mask=None,
                       *, num_cells, num_heads):
    B, S, E1 = memory.shape
    E2 = prev_predict.shape[1]
    H = params["hidden_size"]
    assert H % num_heads == 0, "hidden_size must be divisible by num_heads"
    head_dim = H // num_heads
    scale = 1.0 / math.sqrt(head_dim)
    f32, bf16 = jnp.float32, jnp.bfloat16

    if prev_attn is None:
        prev_attn = jnp.zeros((B, H), f32)
    if prev_state is None:
        prev_state = jnp.zeros((B, num_cells * H), f32)
    if memory_key_padding_mask is None:
        mask_bias = jnp.zeros((B, 1, S), f32)
    else:
        mask_bias = jnp.where(memory_key_padding_mask.astype(bool),
                              jnp.float32(-1e30), jnp.float32(0.0))[:, None, :]

    inputs0 = jnp.concatenate([prev_predict.astype(f32),
                               prev_attn.astype(f32)], axis=1)    # (B, E2+H)

    # Fold 1/sqrt(head_dim) into wq/bq; fuse the output tail (wo@wout).
    wq_s = (params["wq"] * scale).astype(bf16)
    bq_s = (params["bq"] * scale).astype(f32)
    wo_b = params["wo"].astype(bf16)
    bo_f = params["bo"].astype(f32)
    wout_fused = (params["wo"] @ params["wout"]).astype(bf16)
    bout_fused = (params["bo"] @ params["wout"] + params["bout"]).astype(f32)
    # Per-head lane mask: hmask[n, j] = 1 iff lane j belongs to head n.
    hmask = (jnp.arange(H)[None, :] // head_dim
             == jnp.arange(num_heads)[:, None]).astype(f32)

    # ---- kernel 1: K/V projection (tiled, megacore-parallel, bf16 out) -----
    k_all, v_all = _kv_projection(memory.astype(bf16),
                                  params["wk"].astype(bf16),
                                  params["wv"].astype(bf16),
                                  params["bk"].astype(f32),
                                  params["bv"].astype(f32))

    # ---- kernel 2: streamed decode step ------------------------------------
    tb = 8 if (B % 8 == 0) else B               # batch tile (parallel axis)
    ts = S                                      # seq tile (arbitrary axis)
    for cand in (512, 256, 128):
        if S % cand == 0:
            ts = cand
            break
    # TODO(synk): for S not a multiple of 128, ts falls back to full S; pad
    # kv/mask_bias to a 128-multiple if such an S ever exceeds a VMEM tile.

    E2p, Hp = _round_up(E2, 128), _round_up(H, 128)
    out_width = E2p + (num_cells + 1) * Hp

    args = [inputs0, prev_state.astype(f32), k_all, v_all, mask_bias, hmask,
            wq_s, bq_s, wo_b, bo_f, wout_fused, bout_fused]
    for i in range(num_cells):
        g = params["gru"][i]
        args += [g["wih"].astype(bf16), g["whh"].astype(bf16),
                 g["bih"].astype(f32), g["bhh"].astype(f32)]

    def const_spec(a):
        nd = a.ndim
        return pl.BlockSpec(a.shape, lambda b, s: (0,) * nd)

    in_specs = [
        pl.BlockSpec((tb, E2 + H), lambda b, s: (b, 0)),            # inputs0
        pl.BlockSpec((tb, num_cells * H), lambda b, s: (b, 0)),     # prev_state
        pl.BlockSpec((tb, ts, H), lambda b, s: (b, s, 0)),          # k tile
        pl.BlockSpec((tb, ts, H), lambda b, s: (b, s, 0)),          # v tile
        pl.BlockSpec((tb, 1, ts), lambda b, s: (b, 0, s)),          # mask bias
        const_spec(hmask),
    ] + [const_spec(a) for a in args[6:]]

    scratch = [
        pltpu.VMEM((tb, num_heads, H), bf16),    # masked q
        pltpu.VMEM((tb, num_heads, 1), f32),     # running max
        pltpu.VMEM((tb, num_heads, 1), f32),     # running denom
        pltpu.VMEM((tb, num_heads, H), f32),     # context accumulator
    ]

    # Generation-aware VMEM limit from the actual per-tile footprint.
    est = 0
    est += 2 * tb * (E2 + H) * 4 + 2 * tb * num_cells * H * 4
    est += 2 * 2 * tb * ts * H * 2              # k, v tiles (double-buffered)
    est += 2 * tb * ts * 4                      # mask bias tile
    for a in args[5:]:
        est += 2 * int(a.size) * a.dtype.itemsize
    est += 2 * tb * out_width * 4
    est += tb * num_heads * H * (2 + 4) + 2 * tb * num_heads * 4
    est += 2 << 20                              # Mosaic internal headroom
    vmem_limit = int(min(max(est, 16 << 20), 0.7 * _vmem_cap_bytes()))

    grid = (B // tb, S // ts)
    packed = pl.pallas_call(
        _make_step_kernel(H, E2, num_cells),
        out_shape=jax.ShapeDtypeStruct((B, out_width), f32),
        grid=grid,
        in_specs=in_specs,
        out_specs=pl.BlockSpec((tb, out_width), lambda b, s: (b, 0)),
        scratch_shapes=scratch,
        compiler_params=pltpu.CompilerParams(
            dimension_semantics=("parallel", "arbitrary"),
            vmem_limit_bytes=vmem_limit),
    )(*args)

    out = packed[:, :E2]
    ctx = packed[:, E2p:E2p + H]
    hid_base = E2p + Hp
    if Hp == H:
        hid = packed[:, hid_base:hid_base + num_cells * H]
    else:
        hid = jnp.concatenate(
            [packed[:, hid_base + i * Hp:hid_base + i * Hp + H]
             for i in range(num_cells)], axis=1)
    return out, ctx, hid


# ----------------------------------------------------------------------------
# Deterministic parameter init (PyTorch-like uniform(-1/sqrt(fan), 1/sqrt(fan)))
# ----------------------------------------------------------------------------
def init_params(key, memory_size, embed_size, hidden_size, num_cells):
    H = hidden_size
    keys = iter(jax.random.split(key, 64))

    def u(shape, fan):
        s = 1.0 / math.sqrt(fan)
        return jax.random.uniform(next(keys), shape, jnp.float32, -s, s)

    p = {"hidden_size": H, "gru": []}
    for i in range(num_cells):
        in_dim = (hidden_size + embed_size) if i == 0 else hidden_size
        p["gru"].append(dict(
            wih=u((in_dim, 3 * H), H),   # pre-transposed weight_ih
            whh=u((H, 3 * H), H),        # pre-transposed weight_hh
            bih=u((1, 3 * H), H),
            bhh=u((1, 3 * H), H),
        ))
    p["wq"] = u((H, H), H);                     p["bq"] = u((1, H), H)
    p["wk"] = u((memory_size, H), memory_size); p["bk"] = u((1, H), memory_size)
    p["wv"] = u((memory_size, H), memory_size); p["bv"] = u((1, H), memory_size)
    p["wo"] = u((H, H), H);                     p["bo"] = u((1, H), H)
    p["wout"] = u((H, embed_size), H);          p["bout"] = u((1, embed_size), H)
    return p


# ----------------------------------------------------------------------------
# Pure-JAX f32 reference (same math, no Pallas) for correctness checking
# ----------------------------------------------------------------------------
def reference(params, memory, prev_predict, prev_attn, prev_state, mask_bool,
              num_cells, num_heads):
    H = params["hidden_size"]
    head_dim = H // num_heads
    scale = 1.0 / math.sqrt(head_dim)

    inputs = jnp.concatenate([prev_predict, prev_attn], axis=1)
    hid_parts = []
    for i in range(num_cells):
        g = params["gru"][i]
        h_prev = prev_state[:, i * H:(i + 1) * H]
        gi = inputs @ g["wih"] + g["bih"]
        gh = h_prev @ g["whh"] + g["bhh"]
        r = jax.nn.sigmoid(gi[:, :H] + gh[:, :H])
        z = jax.nn.sigmoid(gi[:, H:2 * H] + gh[:, H:2 * H])
        n = jnp.tanh(gi[:, 2 * H:] + r * gh[:, 2 * H:])
        h_new = (1.0 - z) * n + z * h_prev
        hid_parts.append(h_new)
        inputs = h_new
    hid = jnp.concatenate(hid_parts, axis=1)

    q = h_new @ params["wq"] + params["bq"]
    k = jnp.einsum("bse,eh->bsh", memory, params["wk"]) + params["bk"]
    v = jnp.einsum("bse,eh->bsh", memory, params["wv"]) + params["bv"]
    mask = mask_bool.astype(jnp.float32)

    ctx_parts = []
    for hh in range(num_heads):
        sl = slice(hh * head_dim, (hh + 1) * head_dim)
        scores = jnp.einsum("bd,bsd->bs", q[:, sl], k[:, :, sl]) * scale
        scores = jnp.where(mask > 0.5, -1e30, scores)
        w = jax.nn.softmax(scores, axis=-1)
        ctx_parts.append(jnp.einsum("bs,bsd->bd", w, v[:, :, sl]))
    ctx = jnp.concatenate(ctx_parts, axis=-1)
    ctx = ctx @ params["wo"] + params["bo"]
    out = ctx @ params["wout"] + params["bout"]
    return out, ctx, hid


# ----------------------------------------------------------------------------
if __name__ == "__main__":
    B, S = 2, 8
    memory_size, embed_size, hidden_size = 16, 8, 32
    num_cells, num_heads = 2, 2

    key = jax.random.PRNGKey(0)
    kp, km, kpred, kattn, kstate = jax.random.split(key, 5)
    params = init_params(kp, memory_size, embed_size, hidden_size, num_cells)

    memory = jax.random.normal(km, (B, S, memory_size), jnp.float32)
    prev_predict = jax.random.normal(kpred, (B, embed_size), jnp.float32)
    prev_attn = jax.random.normal(kattn, (B, hidden_size), jnp.float32)
    prev_state = jax.random.normal(kstate, (B, num_cells * hidden_size), jnp.float32)
    # True == padded (PyTorch key_padding_mask convention)
    mask_bool = jnp.zeros((B, S), bool).at[1, S - 3:].set(True)

    out, ctx, hid = attention_gru_cell(
        params, memory, prev_predict, prev_attn, prev_state, mask_bool,
        num_cells=num_cells, num_heads=num_heads)
    jax.block_until_ready((out, ctx, hid))

    ref_out, ref_ctx, ref_hid = reference(
        params, memory, prev_predict, prev_attn, prev_state, mask_bool,
        num_cells, num_heads)

    # Tolerance accounts for bf16 MXU operands (f32 accumulation / f32 reference).
    np.testing.assert_allclose(np.asarray(out), np.asarray(ref_out), rtol=2e-2, atol=2e-2)
    np.testing.assert_allclose(np.asarray(ctx), np.asarray(ref_ctx), rtol=2e-2, atol=2e-2)
    np.testing.assert_allclose(np.asarray(hid), np.asarray(ref_hid), rtol=2e-2, atol=2e-2)

    print("KERNEL_OK")
</pallas_src>

<mosaic_0001>
module attributes {stable_mosaic.version = 11 : i64} {
  func.func @_kv_proj_kernel(%arg0: i32, %arg1: i32, %arg2: memref<1x8x16xbf16, #tpu.memory_space<vmem>>, %arg3: memref<16x32xbf16, #tpu.memory_space<vmem>>, %arg4: memref<16x32xbf16, #tpu.memory_space<vmem>>, %arg5: memref<1x32xf32, #tpu.memory_space<vmem>>, %arg6: memref<1x32xf32, #tpu.memory_space<vmem>>, %arg7: memref<1x8x32xbf16, #tpu.memory_space<vmem>>, %arg8: memref<1x8x32xbf16, #tpu.memory_space<vmem>>) attributes {dimension_semantics = [#tpu.dimension_semantics<parallel>, #tpu.dimension_semantics<parallel>], iteration_bounds = array<i64: 2, 1>, scalar_prefetch = 0 : i64, scratch_operands = 0 : i64, tpu.core_type = #tpu.core_type<tc>, window_params = [{transform_indices = @transform_0, window_bounds = array<i64: 1, 8, 16>}, {pipeline_mode = #tpu.pipeline_mode<synchronous>, transform_indices = @transform_1, window_bounds = array<i64: 16, 32>}, {pipeline_mode = #tpu.pipeline_mode<synchronous>, transform_indices = @transform_2, window_bounds = array<i64: 16, 32>}, {pipeline_mode = #tpu.pipeline_mode<synchronous>, transform_indices = @transform_3, window_bounds = array<i64: 1, 32>}, {pipeline_mode = #tpu.pipeline_mode<synchronous>, transform_indices = @transform_4, window_bounds = array<i64: 1, 32>}, {transform_indices = @transform_5, window_bounds = array<i64: 1, 8, 32>}, {transform_indices = @transform_6, window_bounds = array<i64: 1, 8, 32>}]} {
    %c0 = arith.constant 0 : index
    %c0_0 = arith.constant 0 : index
    %c0_1 = arith.constant 0 : index
    %0 = vector.load %arg2[%c0, %c0_0, %c0_1] : memref<1x8x16xbf16, #tpu.memory_space<vmem>>, vector<1x8x16xbf16>
    %1 = vector.shape_cast %0 : vector<1x8x16xbf16> to vector<8x16xbf16>
    %c0_2 = arith.constant 0 : index
    %c0_3 = arith.constant 0 : index
    %2 = vector.load %arg3[%c0_2, %c0_3] : memref<16x32xbf16, #tpu.memory_space<vmem>>, vector<16x32xbf16>
    %cst = arith.constant dense<0.000000e+00> : vector<8x32xf32>
    %3 = tpu.matmul %1, %2, %cst {dimension_numbers = #tpu.dot_dimension_numbers<[1], [0], [0], [1], [0, 0, 1, 1], [], []>} : vector<8x16xbf16>, vector<16x32xbf16>, vector<8x32xf32> -> vector<8x32xf32>
    %c0_4 = arith.constant 0 : index
    %c0_5 = arith.constant 0 : index
    %4 = vector.load %arg5[%c0_4, %c0_5] : memref<1x32xf32, #tpu.memory_space<vmem>>, vector<1x32xf32>
    %5 = vector.broadcast %4 : vector<1x32xf32> to vector<8x32xf32>
    %6 = arith.addf %3, %5 : vector<8x32xf32>
    %7 = arith.truncf %6 : vector<8x32xf32> to vector<8x32xbf16>
    %c0_6 = arith.constant 0 : index
    %c0_7 = arith.constant 0 : index
    %c0_8 = arith.constant 0 : index
    %8 = vector.load %arg7[%c0_6, %c0_7, %c0_8] : memref<1x8x32xbf16, #tpu.memory_space<vmem>>, vector<1x8x32xbf16>
    %9 = vector.shape_cast %8 : vector<1x8x32xbf16> to vector<8x32xbf16>
    %10 = vector.shape_cast %7 : vector<8x32xbf16> to vector<1x8x32xbf16>
    tpu.vector_store %arg7[%c0_6, %c0_7, %c0_8], %10 {strides = array<i32>} : memref<1x8x32xbf16, #tpu.memory_space<vmem>>, vector<1x8x32xbf16>,
    %c0_9 = arith.constant 0 : index
    %c0_10 = arith.constant 0 : index
    %11 = vector.load %arg4[%c0_9, %c0_10] : memref<16x32xbf16, #tpu.memory_space<vmem>>, vector<16x32xbf16>
    %cst_11 = arith.constant dense<0.000000e+00> : vector<8x32xf32>
    %12 = tpu.matmul %1, %11, %cst_11 {dimension_numbers = #tpu.dot_dimension_numbers<[1], [0], [0], [1], [0, 0, 1, 1], [], []>} : vector<8x16xbf16>, vector<16x32xbf16>, vector<8x32xf32> -> vector<8x32xf32>
    %c0_12 = arith.constant 0 : index
    %c0_13 = arith.constant 0 : index
    %13 = vector.load %arg6[%c0_12, %c0_13] : memref<1x32xf32, #tpu.memory_space<vmem>>, vector<1x32xf32>
    %14 = vector.broadcast %13 : vector<1x32xf32> to vector<8x32xf32>
    %15 = arith.addf %12, %14 : vector<8x32xf32>
    %16 = arith.truncf %15 : vector<8x32xf32> to vector<8x32xbf16>
    %c0_14 = arith.constant 0 : index
    %c0_15 = arith.constant 0 : index
    %c0_16 = arith.constant 0 : index
    %17 = vector.load %arg8[%c0_14, %c0_15, %c0_16] : memref<1x8x32xbf16, #tpu.memory_space<vmem>>, vector<1x8x32xbf16>
    %18 = vector.shape_cast %17 : vector<1x8x32xbf16> to vector<8x32xbf16>
    %19 = vector.shape_cast %16 : vector<8x32xbf16> to vector<1x8x32xbf16>
    tpu.vector_store %arg8[%c0_14, %c0_15, %c0_16], %19 {strides = array<i32>} : memref<1x8x32xbf16, #tpu.memory_space<vmem>>, vector<1x8x32xbf16>,
    return
  }
  func.func @transform_0(%arg0: i32, %arg1: i32) -> (i32, i32, i32) {
    %c0_i32 = arith.constant 0 : i32
    %c0_i32_0 = arith.constant 0 : i32
    return %arg0, %arg1, %c0_i32 : i32, i32, i32
  }
  func.func @transform_1(%arg0: i32, %arg1: i32) -> (i32, i32) {
    %c0_i32 = arith.constant 0 : i32
    %c0_i32_0 = arith.constant 0 : i32
    %c0_i32_1 = arith.constant 0 : i32
    return %c0_i32, %c0_i32_0 : i32, i32
  }
  func.func @transform_2(%arg0: i32, %arg1: i32) -> (i32, i32) {
    %c0_i32 = arith.constant 0 : i32
    %c0_i32_0 = arith.constant 0 : i32
    %c0_i32_1 = arith.constant 0 : i32
    return %c0_i32, %c0_i32_0 : i32, i32
  }
  func.func @transform_3(%arg0: i32, %arg1: i32) -> (i32, i32) {
    %c0_i32 = arith.constant 0 : i32
    %c0_i32_0 = arith.constant 0 : i32
    %c0_i32_1 = arith.constant 0 : i32
    return %c0_i32, %c0_i32_0 : i32, i32
  }
  func.func @transform_4(%arg0: i32, %arg1: i32) -> (i32, i32) {
    %c0_i32 = arith.constant 0 : i32
    %c0_i32_0 = arith.constant 0 : i32
    %c0_i32_1 = arith.constant 0 : i32
    return %c0_i32, %c0_i32_0 : i32, i32
  }
  func.func @transform_5(%arg0: i32, %arg1: i32) -> (i32, i32, i32) {
    %c0_i32 = arith.constant 0 : i32
    %c0_i32_0 = arith.constant 0 : i32
    return %arg0, %arg1, %c0_i32 : i32, i32, i32
  }
  func.func @transform_6(%arg0: i32, %arg1: i32) -> (i32, i32, i32) {
    %c0_i32 = arith.constant 0 : i32
    %c0_i32_0 = arith.constant 0 : i32
    return %arg0, %arg1, %c0_i32 : i32, i32, i32
  }
}

</mosaic_0001>

<bundles_post_ra>
// kernel: tpu_custom_call.1
= control target key start
LH: loop header
LB: loop body
LE: loop exit
PB: predicated region body
PF: predicated region fallthrough
CT: control target
= control target key end

     0   :  { %12 = vsyncpa [#allocation3], 0  ;;  %s1295_s0 = inlined_call_operand.hbm [shape: bf16[2,8,16], index: 0, kind: input, shape index: {}]   ;;  %s1296_s1 = inlined_call_operand.hbm [shape: bf16[16,32], index: 1, kind: input, shape index: {}]   ;;  %s1297_s2 = inlined_call_operand.hbm [shape: bf16[16,32], index: 2, kind: input, shape index: {}]   ;;  %s1298_s3 = inlined_call_operand.vmem [shape: f32[1,32], index: 3, kind: input, shape index: {}]   ;;  %s1299_s4 = inlined_call_operand.vmem [shape: f32[1,32], index: 4, kind: input, shape index: {}]   ;;  %s1300_s5 = inlined_call_operand.hbm [shape: bf16[2,8,32], index: 5, kind: output, shape index: {0}]   ;;  %s1301_s6 = inlined_call_operand.hbm [shape: bf16[2,8,32], index: 6, kind: output, shape index: {1}]  }
   0x1   :  { %14 = vsyncpa [#allocation3 + $0x1], 0 }
   0x2   :  { %15 = vsyncpa [#allocation6], 0 }
   0x3   :  { %16 = vsyncpa [#allocation4], 0 }
   0x4   :  { %18 = vsyncpa [#allocation4 + $0x1], 0 }
   0x5   :  { %19 = vsyncpa [#allocation10], 0 }
   0x6   :  { %21 = vsyncpa [#allocation10 + $0x1], 0  ;;  %s999_s21 = smov 0   ;;  %s1001_s22 = smov 0  }
   0x7   :  { %s1003_s23 = smov 0   ;;  %s1005_s24 = smov 0  }
   0x8   :  { %s1007_s25 = smov 0   ;;  %s1009_s26 = smov 0  }
   0x9 LB: > { %s613_s27 = sadd.s32 4294967295, %s953_s26   ;;  %s614_s28 = sadd.s32 4294967294, %s953_s26   ;;  %s953_s26 = sphi %s1009_s26, %s27_s26   ;;  %s949_s25 = sphi %s1007_s25, %s1326_s25   ;;  %s945_s24 = sphi %s1005_s24, %s1325_s24   ;;  %s941_s23 = sphi %s1003_s23, %s1324_s23   ;;  %s937_s22 = sphi %s1001_s22, %s1323_s22   ;;  %s933_s21 = sphi %s999_s21, %s1322_s21  }
   0xa   : > { %p61_p0 = scmp.ne.s32.totalorder %s937_s22, %s933_s21  ;;  %p1033_p1 = scmp.eq.s32.totalorder %s613_s27, 0 }
   0xb   : > { %p1037_p2 = scmp.eq.s32.totalorder %s613_s27, 1  ;;  %p177_p3 = scmp.eq.s32.totalorder %s614_s28, 1 }
   0xc   : > { %s1307_s29 = scalar_select %p1033_p1, 1, 0 }
   0xd   : > { %p1043_p4 = por %p1033_p1, %p61_p0  ;;  %p615_p5 = scmp.ge.s32.totalorder %s953_s26, 1 }
   0xe   : > { %p1048_p6 = por %p177_p3, %p61_p0  ;;  %p212_p7 = scmp.lt.s32.totalorder %s953_s26, 3 }
   0xf   : > { %s1309_s7 = scalar_select %p1043_p4, 1, 0 }
  0x10   : > { %s1310_s8 = scalar_select %p1048_p6, 1, 0 }
  0x11   : > { %p1053_p8 = pnand %p615_p5, %p212_p7  ;;  %s955_s10 = smov [#allocation5]  }
  0x12   : > { %1311 = sst [smem:[#allocation15_spill]] %s1310_s8  ;;  %s224_s11 = sshll.u32 %s955_s10, 4  ;;  %s1057_s11 = int_to_ptr.vmem [resolvable:$true] %s224_s11 }
  0x13   : > { %p669_p9 = pneg %p1053_p8  ;;  %s956_s13 = smov [#allocation7]  }
  0x14   : > { %s237_s14 = sshll.u32 %s956_s13, 4  ;;  %s749_s17 = scalar_lea.hbm %s1296_s1, 128  ;;  %s1068_s14 = int_to_ptr.vmem [resolvable:$true] %s237_s14 }
  0x15   : > { %p1064_p11 = pnand %p669_p9, %p1033_p1  ;;  %p750_p12 = scmp.ne.s32.totalorder %s1296_s1, %s749_s17 }
  0x16   : > { %p756_p5 = scmp.lt.u32.totalorder %s749_s17, %s1296_s1 }
  0x17   : > { %p751_p13 = pneg %p1064_p11 }
  0x19   : > { %p752_p0 = pnand %p751_p13, %p750_p12 }
  0x1b   : > { %p753_p3 = pneg %p752_p0 }
  0x1d   : > { %p758_p7 = pnand %p756_p5, %p753_p3 }
  0x1f   : > { %761 = shalt.err (!%p758_p7)
}
  0x20   : > { %s762_s28 = scalar_lea.vmem %s1057_s11, 128  ;;  %p770_p1 = scmp.lt.s32.totalorder %s1057_s11, %s1057_s11 }
  0x21   : > { %p763_p9 = scmp.ne.s32.totalorder %s1057_s11, %s762_s28  ;;  %p771_p12 = scmp.lt.s32.totalorder %s762_s28, %s762_s28 }
  0x23   : > { %p765_p10 = pnand %p763_p9, %p751_p13  ;;  %p772_p0 = por %p771_p12, %p770_p1 }
  0x25   : > { %p766_p6 = pneg %p765_p10 }
  0x27   : > { %p773_p4 = pnand %p772_p0, %p766_p6 }
  0x29   : > { %776 = shalt.err (!%p773_p4)
}
  0x2a   : > { %s957_s10 = smov 64   ;;  %s958_s13 = smov 4  }
  0x2b   : > { %672 = dma.hbm_to_vmem [thread:$0]  (!%p1064_p11), %s1296_s1, 128, %s1057_s11, [#allocation6], %s957_s10, %s957_s10, %s958_s13  }
  0x2c   : > { %s777_s19 = scalar_lea.hbm %s1297_s2, 128 }
  0x2d   : > { %p778_p1 = scmp.ne.s32.totalorder %s1297_s2, %s777_s19  ;;  %p784_p10 = scmp.lt.u32.totalorder %s777_s19, %s1297_s2 }
  0x2f   : > { %p780_p4 = pnand %p778_p1, %p751_p13 }
  0x31   : > { %p781_p6 = pneg %p780_p4 }
  0x33   : > { %p786_p3 = pnand %p784_p10, %p781_p6 }
  0x35   : > { %789 = shalt.err (!%p786_p3)
}
  0x36   : > { %s790_s11 = scalar_lea.vmem %s1068_s14, 128  ;;  %p798_p12 = scmp.lt.s32.totalorder %s1068_s14, %s1068_s14 }
  0x37   : > { %p791_p5 = scmp.ne.s32.totalorder %s1068_s14, %s790_s11  ;;  %p799_p0 = scmp.lt.s32.totalorder %s790_s11, %s790_s11 }
  0x39   : > { %p793_p7 = pnand %p791_p5, %p751_p13  ;;  %p800_p1 = por %p799_p0, %p798_p12 }
  0x3b   : > { %p794_p9 = pneg %p793_p7 }
  0x3d   : > { %p801_p4 = pnand %p800_p1, %p794_p9 }
  0x3f   : > { %804 = shalt.err (!%p801_p4)
}
  0x40   : > { %675 = dma.hbm_to_vmem [thread:$0]  (!%p1064_p11), %s1297_s2, 128, %s1068_s14, [#allocation6], %s957_s10, %s957_s10, %s958_s13  }
  0x41   : > { %s39_s16 = sadd.s32 1, %s949_s25  ;;  %s48_s17 = sadd.s32 1, %s941_s23 }
  0x42   : > { %p41_p13 = scmp.ge.s32.totalorder %s39_s16, 2  ;;  %p55_p6 = scmp.ne.s32.totalorder %s941_s23, %s937_s22 }
  0x43   : > { %p56_p10 = scmp.eq.s32.totalorder %s953_s26, 0  ;;  %p689_p3 = scmp.lt.s32.totalorder %s953_s26, 2 }
  0x44   : > { %s1328_s16 = smov (%p41_p13, %s39_s16), 0  ;;  %p1132_p7 = por %p1037_p2, %p55_p6 }
  0x45   : > { %p57_p5 = por %p56_p10, %p55_p6  ;;  %s43_s18 = ssub.s32 %s949_s25, %s1328_s16 }
  0x46   : > { %s1314_s12 = scalar_select %p1132_p7, 1, 0 }
  0x47   : > { %s257_s19 = sand.u32 1, %s941_s23   ;;  %p46_p9 = scmp.eq.s32.totalorder %s43_s18, 0 }
  0x48   : > { %s619_s14 = sshll.u32 %s257_s19, 2  ;;  %s620_s10 = sshll.u32 %s949_s25, 6 }
  0x49   : > { %s1141_s13 = scalar_select %p46_p9, %s941_s23, %s48_s17  }
  0x4a   : > { %s1146_s28 = scalar_lea.hbm %s1295_s0, %s620_s10  ;;  %s261_s30 = scalar_lea.vmem [#allocation2], %s619_s14 }
  0x4b   : > { %s269_s11 = sshll.u32 %s261_s30, 4  ;;  %p1150_p2 = pnand %p689_p3, %p57_p5  ;;  %s1154_s11 = int_to_ptr.vmem [resolvable:$true] %s269_s11 }
  0x4c   : > { %s258_s15 = scalar_lea.sflag [#allocation3], %s257_s19  ;;  %s805_s17 = scalar_lea.hbm %s1146_s28, 64 }
  0x4d   : > { %p806_p11 = scmp.ne.s32.totalorder %s1146_s28, %s805_s17  ;;  %p807_p12 = pneg %p1150_p2 }
  0x4e   : > { %s810_s10 = scalar_lea.hbm %s1295_s0, 128  ;;  %p811_p4 = scmp.lt.u32.totalorder %s1146_s28, %s1295_s0 }
  0x4f   : > { %p808_p0 = pnand %p807_p12, %p806_p11  ;;  %p812_p13 = scmp.lt.u32.totalorder %s810_s10, %s805_s17 }
  0x50   : > { %p814_p10 = scmp.lt.u32.totalorder %s805_s17, %s1146_s28 }
  0x51   : > { %p809_p1 = pneg %p808_p0  ;;  %p813_p6 = por %p812_p13, %p811_p4 }
  0x53   : > { %p815_p3 = por %p814_p10, %p813_p6 }
  0x55   : > { %p816_p5 = pnand %p815_p3, %p809_p1 }
  0x57   : > { %819 = shalt.err (!%p816_p5)
}
  0x58   : > { %s820_s19 = scalar_lea.vmem %s1154_s11, 64  ;;  %s959_s30 = smov [#allocation2]  }
  0x59   : > { %p821_p9 = scmp.ne.s32.totalorder %s1154_s11, %s820_s19  ;;  %s825_s18 = sshll.u32 %s959_s30, 4  ;;  %s826_s18 = int_to_ptr.vmem [resolvable:$false] %s825_s18 }
  0x5a   : > { %s827_s14 = scalar_lea.vmem %s826_s18, 128  ;;  %p828_p7 = scmp.lt.s32.totalorder %s1154_s11, %s826_s18 }
  0x5b   : > { %p823_p11 = pnand %p821_p9, %p807_p12  ;;  %p829_p4 = scmp.lt.s32.totalorder %s827_s14, %s820_s19 }
  0x5d   : > { %p824_p0 = pneg %p823_p11  ;;  %p830_p13 = por %p829_p4, %p828_p7 }
  0x5f   : > { %p831_p6 = pnand %p830_p13, %p824_p0 }
  0x61   : > { %834 = shalt.err (!%p831_p6)
}
  0x62   : > { %679 = dma.hbm_to_vmem [thread:$0]  (!%p1150_p2), %s1146_s28, 64, %s1154_s11, %s258_s15  }
  0x63   : > { %278 = sbr.rel (%p1053_p8) target bundleno = 369 (0x171), region = 40  ;;  %s1184_s17 = sand.u32 (!%p1053_p8), 1, %s937_s22  }
  0x64   : > { %s1187_s10 = sshll.u32 (!%p1053_p8), %s1184_s17, 2  ;;  %s281_s20 = scalar_lea.sflag (!%p1053_p8), [#allocation3], %s1184_s17 }
  0x65   : > { %s284_s27 = scalar_lea.vmem (!%p1053_p8), [#allocation2], %s1187_s10  ;;  %p1316_p7 = scmp.ne.s32.totalorder (!%p1053_p8), %s1309_s7, 0 }
  0x6a   : > { %916 = dma.done.wait (%p1316_p7), %s281_s20, 64  }
  0x6b   : > { %918 = vsyncadd (%p1316_p7), %s281_s20, 4294967232  ;;  %p1317_p2 = scmp.ne.s32.totalorder %s1307_s29, 0 }
  0x6d   : > { %920 = dma.done.wait (%p1317_p2), [#allocation6], 256  }
  0x6e   : > { %922 = vsyncadd (%p1317_p2), [#allocation6], 4294967040  ;;  %v960_v0 = vmov 0.0   ;;  %vm961_vm0 = vmmov 0   ;;  %v747_v1 = vld [vmem:[#allocation5] sm:$0xff]   ;;  %v748_v2 = vld [vmem:[#allocation7] sm:$0xff]  }
  0x6f   : > { %643 = vmatprep.subr.bf16.mxu0 %v960_v0  ;;  %649 = vmatprep.subr.bf16.mxu1 %v960_v0  ;;  %v327_v3 = vld [vmem:[%s284_s27] sm:$0xf]  ;;  %vm343_vm1 = vcmask 130048   ;;  %s635_s11 = sshll.u32 %s945_s24, 6  ;;  %s318_s8 = scalar_lea.vmem [#allocation8], %s1187_s10  ;;  %vm388_vm2 = vcmask 257024  }
  0x70   : > { %645 = vmatprep.mubr.msk.bf16.mxu0 %vm961_vm0, %v960_v0  ;;  %651 = vmatprep.mubr.msk.bf16.mxu1 %vm961_vm0, %v960_v0  ;;  %v627_v4 = vld [vmem:[%s1298_s3] ss:$0 sm:$0xff]  ;;  %s467_s15 = sshll.u32 %s318_s8, 4  ;;  %s325_s19 = scalar_lea.vmem [#allocation9], %s1187_s10  ;;  %s1215_s15 = int_to_ptr.vmem [resolvable:$true] %s467_s15 }
  0x71   : > { %644 = vmatpush3.bf16.msra.mxu0 %v747_v1  ;;  %650 = vmatpush3.bf16.msra.mxu1 %v748_v2  ;;  %v630_v5 = vld [vmem:[%s1299_s4] ss:$0 sm:$0xff]  ;;  %s481_s30 = sshll.u32 %s325_s19, 4  ;;  %s1213_s20 = scalar_lea.hbm %s1300_s5, %s635_s11  ;;  %s1222_s30 = int_to_ptr.vmem [resolvable:$true] %s481_s30 }
  0x72   : > { %s1220_s29 = scalar_lea.hbm %s1301_s6, %s635_s11  ;;  %s448_s7 = scalar_lea.sflag [#allocation4], %s1184_s17 }
  0x73   : > { %s835_s9 = scalar_lea.vmem %s1215_s15, 64  ;;  %p1318_p12 = scmp.ne.s32.totalorder %s1314_s12, 0 }
  0x74   : > { %646 = vmatmul.mubr.msk.bf16.vlgmr.msra.gmra.mrb[0].mxu0 %vm343_vm1, %v327_v3  ;;  %652 = vmatmul.mubr.msk.bf16.vlgmr.msra.gmra.mrb[0].mxu1 %vm343_vm1, %v327_v3  ;;  %p836_p8 = scmp.ne.s32.totalorder %s1215_s15, %s835_s9  ;;  %s962_s28 = smov [#allocation8]  }
  0x75   : > { %s839_s18 = sshll.u32 %s962_s28, 4  ;;  %s840_s18 = int_to_ptr.vmem [resolvable:$false] %s839_s18 }
  0x76   : > { %p837_p1 = pnand %p836_p8, %p1318_p12  ;;  %s841_s14 = scalar_lea.vmem %s840_s18, 128 }
  0x77   : > { %p842_p3 = scmp.lt.s32.totalorder %s1215_s15, %s840_s18  ;;  %p843_p5 = scmp.lt.s32.totalorder %s841_s14, %s835_s9 }
  0x78   : > { %p838_p10 = pneg %p837_p1 }
  0x79   : > { %p844_p9 = por %p843_p5, %p842_p3 }
  0x7b   : > { %p845_p11 = pnand %p844_p9, %p838_p10 }
 0x147   : > { %v381_v6 = vpop.f32.mrb[0].mxu0  ;;  %v439_v8 = vpop.f32.mrb[0].mxu1 }
 0x148   : > { %v382_v7 = vadd.f32 %v627_v4, %v381_v6  ;;  %v647_v9 = vpop.f32.mrb[1].mxu0  ;;  %v440_v10 = vadd.f32 %v630_v5, %v439_v8  ;;  %v653_v11 = vpop.f32.mrb[1].mxu1 }
 0x149   : > { %v384_v12 = vpop.f32.mrb[2].mxu0  ;;  %v442_v14 = vpop.f32.mrb[2].mxu1 }
 0x14a   : > { %v387_v13 = vpack.c.bf16 %v382_v7, %v382_v7  ;;  %v648_v15 = vpop.f32.mrb[3].mxu0  ;;  %v445_v16 = vpack.c.bf16 %v440_v10, %v440_v10  ;;  %v654_v17 = vpop.f32.mrb[3].mxu1 }
 0x14c   : > { %389 = vst.msk [vmem:[%s318_s8] sm:$0xf] %vm388_vm2, %v387_v13 }
 0x14d   : > { %848 = shalt.err (!%p845_p11)
}
 0x14e   : > { %s849_s11 = scalar_lea.hbm %s1213_s20, 64  ;;  %s853_s27 = scalar_lea.hbm %s1300_s5, 128 }
 0x14f   : > { %p850_p0 = scmp.ne.s32.totalorder %s1213_s20, %s849_s11  ;;  %p854_p6 = scmp.lt.u32.totalorder %s1213_s20, %s1300_s5 }
 0x150   : > { %p855_p7 = scmp.lt.u32.totalorder %s853_s27, %s849_s11  ;;  %p857_p8 = scmp.lt.u32.totalorder %s849_s11, %s1213_s20 }
 0x151   : > { %p851_p4 = pnand %p850_p0, %p1318_p12 }
 0x152   : > { %p856_p2 = por %p855_p7, %p854_p6 }
 0x153   : > { %p852_p13 = pneg %p851_p4 }
 0x154   : > { %p858_p1 = por %p857_p8, %p856_p2 }
 0x156   : > { %p859_p10 = pnand %p858_p1, %p852_p13 }
 0x158   : > { %862 = shalt.err (!%p859_p10)
}
 0x159   : > { %665 = dma.vmem_to_hbm [thread:$0]  (%p1318_p12), %s1215_s15, 64, %s1213_s20, %s448_s7   ;;  %446 = vst.msk [vmem:[%s325_s19] sm:$0xf] %vm388_vm2, %v445_v16 }
 0x15a   : > { %s453_s9 = scalar_lea.sflag [#allocation10], %s1184_s17  ;;  %s863_s14 = scalar_lea.vmem %s1222_s30, 64 }
 0x15b   : > { %p864_p3 = scmp.ne.s32.totalorder %s1222_s30, %s863_s14  ;;  %s963_s11 = smov [#allocation9]  }
 0x15c   : > { %s867_s8 = sshll.u32 %s963_s11, 4  ;;  %s868_s8 = int_to_ptr.vmem [resolvable:$false] %s867_s8 }
 0x15d   : > { %p865_p5 = pnand %p864_p3, %p1318_p12  ;;  %s869_s24 = scalar_lea.vmem %s868_s8, 128 }
 0x15e   : > { %p870_p11 = scmp.lt.s32.totalorder %s1222_s30, %s868_s8  ;;  %p871_p0 = scmp.lt.s32.totalorder %s869_s24, %s863_s14 }
 0x15f   : > { %p866_p9 = pneg %p865_p5 }
 0x160   : > { %p872_p4 = por %p871_p0, %p870_p11 }
 0x162   : > { %p873_p13 = pnand %p872_p4, %p866_p9 }
 0x164   : > { %876 = shalt.err (!%p873_p13)
}
 0x165   : > { %s877_s17 = scalar_lea.hbm %s1220_s29, 64  ;;  %s881_s19 = scalar_lea.hbm %s1301_s6, 128 }
 0x166   : > { %p878_p6 = scmp.ne.s32.totalorder %s1220_s29, %s877_s17  ;;  %p882_p8 = scmp.lt.u32.totalorder %s1220_s29, %s1301_s6 }
 0x167   : > { %p883_p1 = scmp.lt.u32.totalorder %s881_s19, %s877_s17  ;;  %p885_p3 = scmp.lt.u32.totalorder %s877_s17, %s1220_s29 }
 0x168   : > { %p879_p7 = pnand %p878_p6, %p1318_p12 }
 0x169   : > { %p884_p10 = por %p883_p1, %p882_p8 }
 0x16a   : > { %p880_p2 = pneg %p879_p7 }
 0x16b   : > { %p886_p5 = por %p885_p3, %p884_p10 }
 0x16d   : > { %p887_p9 = pnand %p886_p5, %p880_p2 }
 0x16f   : > { %890 = shalt.err (!%p887_p9)
}
 0x170   : > { %666 = dma.vmem_to_hbm [thread:$0]  (%p1318_p12), %s1222_s30, 64, %s1220_s29, %s453_s9  }
 0x171 PF: > { %s1319_s27 = sld [smem:[#allocation15_spill]]  ;;  %s493_s28 = sand.u32 1, %s933_s21  }
 0x172   : > { %p1321_p0 = scmp.ge.s32.totalorder %s953_s26, 2  ;;  %s494_s18 = scalar_lea.sflag [#allocation4], %s493_s28 }
 0x177   : > { %p1320_p11 = scmp.ne.s32.totalorder %s1319_s27, 0 }
 0x179   : > { %p681_p4 = pnand %p1321_p0, %p1320_p11 }
 0x17b   : > { %924 = dma.done.wait (!%p681_p4), %s494_s18, 64  }
 0x17c   : > { %926 = vsyncadd (!%p681_p4), %s494_s18, 4294967232  ;;  %s503_s14 = scalar_lea.sflag [#allocation10], %s493_s28 }
 0x17d   : > { %928 = dma.done.wait (!%p681_p4), %s503_s14, 64  }
 0x17e   : > { %930 = vsyncadd (!%p681_p4), %s503_s14, 4294967232  ;;  %s27_s26 = sadd.s32 1, %s953_s26   ;;  %s1322_s21 = smov %s937_s22 }
 0x17f   : > { %p24_p13 = scmp.ge.s32.totalorder %s27_s26, 4   ;;  %s1323_s22 = smov %s941_s23 }
 0x180   : > { %s1324_s23 = smov %s1141_s13  ;;  %s1325_s24 = smov %s949_s25 }
 0x181   : > { %s1326_s25 = smov %s1328_s16  ;;  %26 = sbr.rel (!%p24_p13) target bundleno = 9 (0x9), region = 110 }
 0x188   :  { %508 = vsyncpa [#allocation3], 1 }
 0x189   :  { %510 = vsyncpa [#allocation3 + $0x1], 1 }
 0x18a   :  { %511 = vsyncpa [#allocation6], 1 }
 0x18b   :  { %512 = vsyncpa [#allocation4], 1 }
 0x18c   :  { %514 = vsyncpa [#allocation4 + $0x1], 1 }
 0x18d   :  { %515 = vsyncpa [#allocation10], 1 }
 0x18e   :  { %517 = vsyncpa [#allocation10 + $0x1], 1 }

</bundles_post_ra>
